<compile_context>
chip_gen: v7x
topology: tpu7x:2x2x1
jax: 0.10.0
libtpu: 0.0.40
codegen_flags: <defaults>
</compile_context>

<pallas_src>
import jax
import jax.numpy as jnp
from jax.experimental import pallas as pl
from jax.experimental.pallas import tpu as pltpu


_LANES = 128
# 4096 rows x 128 lanes x 4 B = 2 MiB per f32 block; with 2 inputs x 2 buffers
# + output buffers this stays far below the 32 MiB scoped-VMEM default and
# v7x's 64 MiB physical VMEM.
_MAX_BLOCK_ROWS = 4096


def _edge_importance_kernel(ei_ref, a_ref, o_ref):
    # Elementwise multiply, single whole-tile store (one unmasked vst per vreg;
    # v5e has a single store slot, so this is the throughput ceiling there).
    o_ref[...] = ei_ref[...] * a_ref[...]


def _elementwise_mul_2d(ei2d: jax.Array, a2d: jax.Array) -> jax.Array:
    """Lane-dense (rows, 128) elementwise multiply."""
    rows, lanes = a2d.shape
    if rows <= _MAX_BLOCK_ROWS:
        # Entire problem as one block: no grid, zero per-step overhead.
        return pl.pallas_call(
            _edge_importance_kernel,
            out_shape=jax.ShapeDtypeStruct((rows, lanes), a2d.dtype),
            input_output_aliases={1: 0},  # output reuses A's HBM buffer
        )(ei2d, a2d)

    # Scaled-up case: lane-dense row tiles with a capped VMEM footprint.
    spec = pl.BlockSpec((_MAX_BLOCK_ROWS, lanes), lambda i: (i, 0))
    return pl.pallas_call(
        _edge_importance_kernel,
        out_shape=jax.ShapeDtypeStruct((rows, lanes), a2d.dtype),
        grid_spec=pltpu.PrefetchScalarGridSpec(
            num_scalar_prefetch=0,
            grid=(pl.cdiv(rows, _MAX_BLOCK_ROWS),),
            in_specs=[spec, spec],
            out_specs=spec,
        ),
        input_output_aliases={1: 0},
        compiler_params=pltpu.CompilerParams(
            dimension_semantics=("parallel",),
        ),
    )(ei2d, a2d)


@jax.jit
def edge_importance_forward(edge_importance: jax.Array, A: jax.Array) -> jax.Array:
    """Computes EdgeImportance * A with a Pallas TPU kernel.

    edge_importance and A must have identical shape and dtype.
    """
    assert edge_importance.shape == A.shape
    assert edge_importance.dtype == A.dtype

    orig_shape = A.shape
    total = 1
    for d in orig_shape:
        total *= d

    if total % _LANES == 0:
        # Flatten to a lane-dense 2D slab (e.g. 3*16*16 = 768 = 6 x 128),
        # multiply, and reshape back outside the kernel.
        rows = total // _LANES
        out2d = _elementwise_mul_2d(
            edge_importance.reshape(rows, _LANES),
            A.reshape(rows, _LANES),
        )
        return out2d.reshape(orig_shape)

    # Fallback (element count not a multiple of 128): single full-array block.
    # Block dims equal the full array dims, which satisfies the (8,128) rule.
    return pl.pallas_call(
        _edge_importance_kernel,
        out_shape=jax.ShapeDtypeStruct(orig_shape, A.dtype),
        input_output_aliases={1: 0},
    )(edge_importance, A)


class EdgeImportanceLayer:
    """JAX mirror of the PyTorch module: parameter initialized to ones(A.shape)."""

    def __init__(self, A: jax.Array):
        # nn.Parameter(torch.ones(A.size()))
        self.edge_importance = jnp.ones(A.shape, dtype=A.dtype)

    def __call__(self, A: jax.Array) -> jax.Array:
        return edge_importance_forward(self.edge_importance, A)


if __name__ == "__main__":
    key = jax.random.PRNGKey(0)
    k_a, k_ei = jax.random.split(key)

    # Small ST-GCN-like adjacency stack: K=3 partitions, V=16 graph nodes.
    K, V = 3, 16
    A = jax.random.normal(k_a, (K, V, V), dtype=jnp.float32)

    layer = EdgeImportanceLayer(A)

    # Default (ones) parameter: output must equal A exactly.
    out_ones = jax.block_until_ready(layer(A))
    assert out_ones.shape == A.shape and out_ones.dtype == A.dtype
    assert jnp.allclose(out_ones, A, atol=0.0, rtol=0.0)

    # Non-trivial parameter: verify the elementwise multiply against pure JAX.
    layer.edge_importance = jax.random.normal(k_ei, (K, V, V), dtype=jnp.float32)
    out = jax.block_until_ready(layer(A))
    ref = layer.edge_importance * A
    assert jnp.allclose(out, ref, rtol=1e-6, atol=1e-6)

    print("KERNEL_OK")
</pallas_src>

<mosaic_0001>
module attributes {stable_mosaic.version = 11 : i64} {
  func.func @_edge_importance_kernel(%arg0: memref<6x128xf32, #tpu.memory_space<vmem>>, %arg1: memref<6x128xf32, #tpu.memory_space<vmem>>, %arg2: memref<6x128xf32, #tpu.memory_space<vmem>>) attributes {dimension_semantics = [], scalar_prefetch = 0 : i64, scratch_operands = 0 : i64, tpu.core_type = #tpu.core_type<tc>} {
    %c0 = arith.constant 0 : index
    %c0_0 = arith.constant 0 : index
    %0 = vector.load %arg0[%c0, %c0_0] : memref<6x128xf32, #tpu.memory_space<vmem>>, vector<6x128xf32>
    %c0_1 = arith.constant 0 : index
    %c0_2 = arith.constant 0 : index
    %1 = vector.load %arg1[%c0_1, %c0_2] : memref<6x128xf32, #tpu.memory_space<vmem>>, vector<6x128xf32>
    %2 = arith.mulf %0, %1 : vector<6x128xf32>
    %c0_3 = arith.constant 0 : index
    %c0_4 = arith.constant 0 : index
    %3 = vector.load %arg2[%c0_3, %c0_4] : memref<6x128xf32, #tpu.memory_space<vmem>>, vector<6x128xf32>
    tpu.vector_store %arg2[%c0_3, %c0_4], %2 {strides = array<i32>} : memref<6x128xf32, #tpu.memory_space<vmem>>, vector<6x128xf32>,
    return
  }
}

</mosaic_0001>

<bundles_post_ra>
// kernel: edge_importance_forward.1
= control target key start
LH: loop header
LB: loop body
LE: loop exit
PB: predicated region body
PF: predicated region fallthrough
CT: control target
= control target key end

     0   :  { %s43_s0 = inlined_call_operand.vmem [shape: f32[6,128], index: 0, kind: input, shape index: {}]   ;;  %s44_s1 = inlined_call_operand.vmem [shape: f32[6,128], index: 1, kind: input, shape index: {}, may-alias: {1,2}]   ;;  %s45_s2 = inlined_call_operand.vmem [shape: f32[6,128], index: 2, kind: output, shape index: {}, may-alias: {1,2}]  }
   0x1   :  { %v11_v0 = vld [vmem:[%s43_s0] sm:$0x3f] }
   0x2   :  { %v12_v1 = vld [vmem:[%s44_s1] sm:$0x3f] }
   0x3   :  { %v13_v2 = vmul.f32 %v12_v1, %v11_v0 }
   0x5   :  { %14 = vst [vmem:[%s45_s2] sm:$0x3f] %v13_v2 }

</bundles_post_ra>
